<compile_context>
chip_gen: v5e
topology: v5e:2x2
jax: 0.10.0
libtpu: 0.0.40
codegen_flags: <defaults>
</compile_context>

<pallas_src>
import functools

import jax
import jax.numpy as jnp
from jax.experimental import pallas as pl
from jax.experimental.pallas import tpu as pltpu

_LANES = 128                    # TPU vreg lane width
_SUBLANES = 8                   # TPU vreg sublane count
_FAST_PATH_MAX_ELEMS = 32768    # below this, fused XLA beats a pallas_call
_NUM_CORE_SPLITS = 2            # leading "parallel" grid axis (v7x: 2 TCs)


def _reward_loss_kernel(o1_ref, o2_ref, out_ref, acc_ref, *,
                        n_valid: int, tile_rows: int, steps: int):
    c = pl.program_id(0)        # core-split axis ("parallel")
    i = pl.program_id(1)        # streaming / reduction axis ("arbitrary")

    @pl.when(i == 0)
    def _():
        acc_ref[...] = jnp.zeros_like(acc_ref)

    # Upcast in-kernel (inputs may be bf16; v5e has no bf16 VPU/EUP paths).
    d = o1_ref[...].astype(jnp.float32) - o2_ref[...].astype(jnp.float32)

    # -log(sigmoid(d)) == softplus(-d), computed stably:
    #   max(-d, 0) + log(1 + exp(-|d|));  exp(-|d|) <= 1, log argument >= 1.
    loss = jnp.maximum(-d, 0.0) + jnp.log(1.0 + jnp.exp(-jnp.abs(d)))

    # Unclamped global block index (index_map clamps the fetch; mask here).
    gb = c * steps + i
    block_end = (gb + 1) * (tile_rows * _LANES)

    # Common case: block fully inside the valid range -> pure VPU partial sum.
    @pl.when(block_end <= n_valid)
    def _():
        acc_ref[...] += jnp.sum(loss, axis=0, keepdims=True)

    # Rare case: block contains padding / ragged tail / duplicated OOB block.
    @pl.when(block_end > n_valid)
    def _():
        row = jax.lax.broadcasted_iota(jnp.int32, loss.shape, 0)
        lane = jax.lax.broadcasted_iota(jnp.int32, loss.shape, 1)
        gidx = (gb * tile_rows + row) * _LANES + lane
        masked = jnp.where(gidx < n_valid, loss, 0.0)
        acc_ref[...] += jnp.sum(masked, axis=0, keepdims=True)

    @pl.when(i == pl.num_programs(1) - 1)
    def _():
        # Lane-dense (1, 1, 128) per-core partial; unmasked full-lane store.
        out_ref[...] = acc_ref[...].reshape(1, 1, _LANES)


def reward_loss(output1: jax.Array, output2: jax.Array, *,
                max_tile_rows: int = 2048,
                use_pallas: bool | None = None) -> jax.Array:
    """Pallas equivalent of RewardLoss.forward. Returns a scalar f32 ()."""
    assert output1.shape == output2.shape
    n = int(output1.size)
    assert n > 0
    inv_n = 1.0 / n   # mean as multiply; folded at trace time

    o1 = output1.reshape(-1)
    o2 = output2.reshape(-1)

    if use_pallas is None:
        use_pallas = n > _FAST_PATH_MAX_ELEMS
    if not use_pallas:
        # Small-batch fast path: fused XLA expression, no kernel launch / pad.
        d = o1.astype(jnp.float32) - o2.astype(jnp.float32)
        return jnp.mean(-jax.nn.log_sigmoid(d))

    # Lane-dense packing: pad only the ragged tail to the next multiple of
    # 128; the reshape of the contiguous (n_padded,) array is a free bitcast.
    rem = n % _LANES
    if rem:
        o1 = jnp.pad(o1, (0, _LANES - rem))
        o2 = jnp.pad(o2, (0, _LANES - rem))
    rows = (n + _LANES - 1) // _LANES
    o1 = o1.reshape(rows, _LANES)
    o2 = o2.reshape(rows, _LANES)

    # Tile over rows. If the block spans the full row range it may be any
    # size (block == full dim); otherwise force a multiple of 8 sublanes.
    tile_rows = max(1, min(int(max_tile_rows), rows))
    if tile_rows < rows:
        tile_rows = max(_SUBLANES, (tile_rows // _SUBLANES) * _SUBLANES)

    total_blocks = -(-rows // tile_rows)
    n_splits = _NUM_CORE_SPLITS if total_blocks >= _NUM_CORE_SPLITS else 1
    steps = -(-total_blocks // n_splits)

    def in_index(c, i):
        # Clamp so duplicated trailing steps of the last split re-read the
        # last valid block; their contribution is zeroed by the kernel mask.
        gb = jnp.minimum(c * steps + i, total_blocks - 1)
        return (gb, 0)

    kernel = functools.partial(
        _reward_loss_kernel, n_valid=n, tile_rows=tile_rows, steps=steps)

    itemsize = jnp.dtype(output1.dtype).itemsize
    partials = pl.pallas_call(
        kernel,
        out_shape=jax.ShapeDtypeStruct((n_splits, 1, _LANES), jnp.float32),
        grid_spec=pltpu.PrefetchScalarGridSpec(
            num_scalar_prefetch=0,
            grid=(n_splits, steps),
            in_specs=[
                pl.BlockSpec((tile_rows, _LANES), in_index),
                pl.BlockSpec((tile_rows, _LANES), in_index),
            ],
            out_specs=pl.BlockSpec((1, 1, _LANES), lambda c, i: (c, 0, 0)),
            scratch_shapes=[pltpu.VMEM((1, _LANES), jnp.float32)],
        ),
        compiler_params=pltpu.CompilerParams(
            dimension_semantics=("parallel", "arbitrary"),
        ),
        cost_estimate=pl.CostEstimate(
            flops=6 * n,
            transcendentals=2 * n,
            bytes_accessed=2 * rows * _LANES * itemsize + n_splits * _LANES * 4,
        ),
    )(o1, o2)

    # Cross-core + cross-lane finish (tiny), then the mean (1/N multiply).
    return jnp.sum(partials) * inv_n


if __name__ == "__main__":
    key = jax.random.PRNGKey(0)
    k1, k2, k3, k4 = jax.random.split(key, 4)

    def ref_loss(a, b):
        d = a.astype(jnp.float32) - b.astype(jnp.float32)
        return jnp.mean(-jax.nn.log_sigmoid(d))

    # --- Small reward-model batch: (batch, 1) scores -> fast path. ----------
    batch = 8
    o1_small = jax.random.normal(k1, (batch, 1), dtype=jnp.float32)
    o2_small = jax.random.normal(k2, (batch, 1), dtype=jnp.float32)
    loss_small = reward_loss(o1_small, o2_small)
    jax.block_until_ready(loss_small)
    assert loss_small.shape == ()
    assert jnp.allclose(loss_small, ref_loss(o1_small, o2_small),
                        rtol=1e-5, atol=1e-6), (loss_small,)

    # --- Non-aligned batch forced through the Pallas kernel (single block). -
    big = 3333  # not a multiple of 128 or 8
    o1_big = 3.0 * jax.random.normal(k3, (big, 1), dtype=jnp.float32)
    o2_big = 3.0 * jax.random.normal(k4, (big, 1), dtype=jnp.float32)
    ref_big = ref_loss(o1_big, o2_big)

    loss_big = reward_loss(o1_big, o2_big, use_pallas=True)
    jax.block_until_ready(loss_big)
    assert loss_big.shape == ()
    assert jnp.allclose(loss_big, ref_big, rtol=1e-5, atol=1e-5), (
        loss_big, ref_big)

    # --- Same data, tiny tiles: multi-step grid + dual-core split + ragged
    #     last block + padding mask all exercised. ---------------------------
    loss_tiled = reward_loss(o1_big, o2_big, use_pallas=True, max_tile_rows=8)
    jax.block_until_ready(loss_tiled)
    assert loss_tiled.shape == ()
    assert jnp.allclose(loss_tiled, ref_big, rtol=1e-5, atol=1e-5), (
        loss_tiled, ref_big)

    print("KERNEL_OK")
</pallas_src>

<mosaic_0001>
module attributes {stable_mosaic.version = 11 : i64} {
  func.func @_reward_loss_kernel(%arg0: i32, %arg1: i32, %arg2: memref<27x128xf32, #tpu.memory_space<vmem>>, %arg3: memref<27x128xf32, #tpu.memory_space<vmem>>, %arg4: memref<1x1x128xf32, #tpu.memory_space<vmem>>, %arg5: memref<1x128xf32, #tpu.memory_space<vmem>>) attributes {dimension_semantics = [#tpu.dimension_semantics<parallel>, #tpu.dimension_semantics<arbitrary>], iteration_bounds = array<i64: 1, 1>, scalar_prefetch = 0 : i64, scratch_operands = 1 : i64, tpu.core_type = #tpu.core_type<tc>, window_params = [{transform_indices = @transform_0, window_bounds = array<i64: 27, 128>}, {transform_indices = @transform_1, window_bounds = array<i64: 27, 128>}, {transform_indices = @transform_2, window_bounds = array<i64: 1, 1, 128>}]} {
    %c0_i32 = arith.constant 0 : i32
    %0 = arith.cmpi eq, %arg1, %c0_i32 : i32
    %1 = arith.extui %0 : i1 to i32
    %c0_i32_0 = arith.constant 0 : i32
    %2 = arith.cmpi ne, %1, %c0_i32_0 : i32
    scf.if %2 {
      %cst_13 = arith.constant 0.000000e+00 : f32
      %31 = vector.broadcast %cst_13 : f32 to vector<1x128xf32>
      %c0_14 = arith.constant 0 : index
      %c0_15 = arith.constant 0 : index
      %32 = vector.load %arg5[%c0_14, %c0_15] : memref<1x128xf32, #tpu.memory_space<vmem>>, vector<1x128xf32>
      tpu.vector_store %arg5[%c0_14, %c0_15], %31 {strides = array<i32>} : memref<1x128xf32, #tpu.memory_space<vmem>>, vector<1x128xf32>,
    } else {
    }
    %c0 = arith.constant 0 : index
    %c0_1 = arith.constant 0 : index
    %3 = vector.load %arg2[%c0, %c0_1] : memref<27x128xf32, #tpu.memory_space<vmem>>, vector<27x128xf32>
    %c0_2 = arith.constant 0 : index
    %c0_3 = arith.constant 0 : index
    %4 = vector.load %arg3[%c0_2, %c0_3] : memref<27x128xf32, #tpu.memory_space<vmem>>, vector<27x128xf32>
    %5 = arith.subf %3, %4 : vector<27x128xf32>
    %cst = arith.constant 0.000000e+00 : f32
    %6 = vector.broadcast %cst : f32 to vector<27x128xf32>
    %7 = arith.subf %6, %5 : vector<27x128xf32>
    %cst_4 = arith.constant 0.000000e+00 : f32
    %8 = vector.broadcast %cst_4 : f32 to vector<27x128xf32>
    %9 = arith.maximumf %7, %8 : vector<27x128xf32>
    %10 = math.absf %5 : vector<27x128xf32>
    %cst_5 = arith.constant 0.000000e+00 : f32
    %11 = vector.broadcast %cst_5 : f32 to vector<27x128xf32>
    %12 = arith.subf %11, %10 : vector<27x128xf32>
    %13 = math.exp %12 : vector<27x128xf32>
    %cst_6 = arith.constant 1.000000e+00 : f32
    %14 = vector.broadcast %cst_6 : f32 to vector<27x128xf32>
    %15 = arith.addf %14, %13 : vector<27x128xf32>
    %16 = math.log %15 : vector<27x128xf32>
    %17 = arith.addf %9, %16 : vector<27x128xf32>
    %c1_i32 = arith.constant 1 : i32
    %18 = arith.muli %arg0, %c1_i32 : i32
    %19 = arith.addi %18, %arg1 : i32
    %c1_i32_7 = arith.constant 1 : i32
    %20 = arith.addi %19, %c1_i32_7 : i32
    %c3456_i32 = arith.constant 3456 : i32
    %21 = arith.muli %20, %c3456_i32 : i32
    %c3333_i32 = arith.constant 3333 : i32
    %22 = arith.cmpi sle, %21, %c3333_i32 : i32
    %23 = arith.extui %22 : i1 to i32
    %c0_i32_8 = arith.constant 0 : i32
    %24 = arith.cmpi ne, %23, %c0_i32_8 : i32
    scf.if %24 {
      %c0_13 = arith.constant 0 : index
      %c0_14 = arith.constant 0 : index
      %31 = vector.load %arg5[%c0_13, %c0_14] : memref<1x128xf32, #tpu.memory_space<vmem>>, vector<1x128xf32>
      %cst_15 = arith.constant dense<0.000000e+00> : vector<128xf32>
      %32 = vector.multi_reduction <add>, %17, %cst_15 [0] : vector<27x128xf32> to vector<128xf32>
      %33 = vector.shape_cast %32 : vector<128xf32> to vector<1x128xf32>
      %34 = arith.addf %31, %33 : vector<1x128xf32>
      %c0_16 = arith.constant 0 : index
      %c0_17 = arith.constant 0 : index
      %35 = vector.load %arg5[%c0_16, %c0_17] : memref<1x128xf32, #tpu.memory_space<vmem>>, vector<1x128xf32>
      tpu.vector_store %arg5[%c0_16, %c0_17], %34 {strides = array<i32>} : memref<1x128xf32, #tpu.memory_space<vmem>>, vector<1x128xf32>,
    } else {
    }
    %c3333_i32_9 = arith.constant 3333 : i32
    %25 = arith.cmpi sgt, %21, %c3333_i32_9 : i32
    %26 = arith.extui %25 : i1 to i32
    %c0_i32_10 = arith.constant 0 : i32
    %27 = arith.cmpi ne, %26, %c0_i32_10 : i32
    scf.if %27 {
      %31 = tpu.iota {dimensions = array<i32: 0>} : vector<27x128xi32>
      %32 = tpu.iota {dimensions = array<i32: 1>} : vector<27x128xi32>
      %c27_i32 = arith.constant 27 : i32
      %33 = arith.muli %19, %c27_i32 : i32
      %34 = vector.broadcast %33 : i32 to vector<27x128xi32>
      %35 = arith.addi %34, %31 : vector<27x128xi32>
      %c128_i32 = arith.constant 128 : i32
      %36 = vector.broadcast %c128_i32 : i32 to vector<27x128xi32>
      %37 = arith.muli %35, %36 : vector<27x128xi32>
      %38 = arith.addi %37, %32 : vector<27x128xi32>
      %c3333_i32_13 = arith.constant 3333 : i32
      %39 = vector.broadcast %c3333_i32_13 : i32 to vector<27x128xi32>
      %40 = arith.cmpi slt, %38, %39 : vector<27x128xi32>
      %cst_14 = arith.constant 0.000000e+00 : f32
      %41 = vector.broadcast %cst_14 : f32 to vector<27x128xf32>
      %42 = arith.select %40, %17, %41 : vector<27x128xi1>, vector<27x128xf32>
      %c0_15 = arith.constant 0 : index
      %c0_16 = arith.constant 0 : index
      %43 = vector.load %arg5[%c0_15, %c0_16] : memref<1x128xf32, #tpu.memory_space<vmem>>, vector<1x128xf32>
      %cst_17 = arith.constant dense<0.000000e+00> : vector<128xf32>
      %44 = vector.multi_reduction <add>, %42, %cst_17 [0] : vector<27x128xf32> to vector<128xf32>
      %45 = vector.shape_cast %44 : vector<128xf32> to vector<1x128xf32>
      %46 = arith.addf %43, %45 : vector<1x128xf32>
      %c0_18 = arith.constant 0 : index
      %c0_19 = arith.constant 0 : index
      %47 = vector.load %arg5[%c0_18, %c0_19] : memref<1x128xf32, #tpu.memory_space<vmem>>, vector<1x128xf32>
      tpu.vector_store %arg5[%c0_18, %c0_19], %46 {strides = array<i32>} : memref<1x128xf32, #tpu.memory_space<vmem>>, vector<1x128xf32>,
    } else {
    }
    %c0_i32_11 = arith.constant 0 : i32
    %28 = arith.cmpi eq, %arg1, %c0_i32_11 : i32
    %29 = arith.extui %28 : i1 to i32
    %c0_i32_12 = arith.constant 0 : i32
    %30 = arith.cmpi ne, %29, %c0_i32_12 : i32
    scf.if %30 {
      %c0_13 = arith.constant 0 : index
      %c0_14 = arith.constant 0 : index
      %31 = vector.load %arg5[%c0_13, %c0_14] : memref<1x128xf32, #tpu.memory_space<vmem>>, vector<1x128xf32>
      %32 = vector.shape_cast %31 : vector<1x128xf32> to vector<1x1x128xf32>
      %c0_15 = arith.constant 0 : index
      %c0_16 = arith.constant 0 : index
      %c0_17 = arith.constant 0 : index
      %33 = vector.load %arg4[%c0_15, %c0_16, %c0_17] : memref<1x1x128xf32, #tpu.memory_space<vmem>>, vector<1x1x128xf32>
      tpu.vector_store %arg4[%c0_15, %c0_16, %c0_17], %32 {strides = array<i32>} : memref<1x1x128xf32, #tpu.memory_space<vmem>>, vector<1x1x128xf32>,
    } else {
    }
    return
  }
  func.func @transform_0(%arg0: i32, %arg1: i32) -> (i32, i32) {
    %c1_i32 = arith.constant 1 : i32
    %0 = arith.muli %arg0, %c1_i32 : i32
    %1 = arith.addi %0, %arg1 : i32
    %c0_i32 = arith.constant 0 : i32
    %2 = arith.minsi %1, %c0_i32 : i32
    %c0_i32_0 = arith.constant 0 : i32
    %c0_i32_1 = arith.constant 0 : i32
    return %2, %c0_i32_0 : i32, i32
  }
  func.func @transform_1(%arg0: i32, %arg1: i32) -> (i32, i32) {
    %c1_i32 = arith.constant 1 : i32
    %0 = arith.muli %arg0, %c1_i32 : i32
    %1 = arith.addi %0, %arg1 : i32
    %c0_i32 = arith.constant 0 : i32
    %2 = arith.minsi %1, %c0_i32 : i32
    %c0_i32_0 = arith.constant 0 : i32
    %c0_i32_1 = arith.constant 0 : i32
    return %2, %c0_i32_0 : i32, i32
  }
  func.func @transform_2(%arg0: i32, %arg1: i32) -> (i32, i32, i32) {
    %c0_i32 = arith.constant 0 : i32
    %c0_i32_0 = arith.constant 0 : i32
    %c0_i32_1 = arith.constant 0 : i32
    return %arg0, %c0_i32, %c0_i32_0 : i32, i32, i32
  }
}

</mosaic_0001>

<bundles_post_ra>
// kernel: tpu_custom_call.1
= control target key start
LH: loop header
LB: loop body
LE: loop exit
PB: predicated region body
PF: predicated region fallthrough
CT: control target
= control target key end

     0   :  { %7 = vsyncpa [#allocation4], 0  ;;  %s346_s0 = inlined_call_operand.hbm [shape: f32[27,128], index: 0, kind: input, shape index: {}]   ;;  %s347_s1 = inlined_call_operand.hbm [shape: f32[27,128], index: 1, kind: input, shape index: {}]   ;;  %s348_s2 = inlined_call_operand.hbm [shape: f32[1,1,128], index: 2, kind: output, shape index: {}]  }
   0x1   :  { %8 = vsyncpa [#allocation7], 0 }
   0x2   :  { %9 = vsyncpa [#allocation5], 0  ;;  %s20_s11 = sshll.u32 %s346_s0, 4  ;;  %s316_s12 = smov [#allocation3]   ;;  %s21_s11 = int_to_ptr.hbm [resolvable:$true] %s20_s11 }
   0x3   :  { %s22_s13 = sshll.u32 %s316_s12, 4  ;;  %s39_s16 = sshll.u32 %s347_s1, 4  ;;  %s23_s13 = int_to_ptr.vmem [resolvable:$true] %s22_s13  ;;  %s40_s16 = int_to_ptr.hbm [resolvable:$true] %s39_s16 }
   0x4   :  { %s317_s17 = smov 128   ;;  %s318_s18 = smov 8  }
   0x5   :  { %28 = dma.hbm_to_vmem [thread:$0]  %s21_s11, 512, %s23_s13, [#allocation4], %s317_s17, %s317_s17, %s318_s18  }
   0x6   :  { %s319_s19 = smov [#allocation6]  }
   0x7   :  { %s41_s20 = sshll.u32 %s319_s19, 4  ;;  %s42_s20 = int_to_ptr.vmem [resolvable:$true] %s41_s20 }
   0x8   :  { %47 = dma.hbm_to_vmem [thread:$0]  %s40_s16, 512, %s42_s20, [#allocation7], %s317_s17, %s317_s17, %s318_s18  }
   0x9   :  { %310 = dma.done.wait [#allocation4], 512  }
   0xa   :  { %311 = vsyncadd [#allocation4], 4294966784 }
   0xb   :  { %312 = dma.done.wait [#allocation7], 512  }
   0xc   :  { %313 = vsyncadd [#allocation7], 4294966784  ;;  %v320_v0 = vmov 0.0   ;;  %v69_v1 = vld [vmem:[#allocation3] sm:$0xff]  ;;  %v70_v2 = vld [vmem:[#allocation3 + $0x8] sm:$0xff]  ;;  %v146_v23 = vlaneseq  ;;  %vm178_vm4 = vcmask 1042432  }
   0xd   :  { %68 = vst [vmem:[#allocation2] sm:$0x1] %v320_v0  ;;  %v71_v3 = vld [vmem:[#allocation3 + $0x10] sm:$0xff]  ;;  %v72_v4 = vld [vmem:[#allocation3 + $0x18] sm:$0x7]  ;;  %v73_v5 = vld [vmem:[#allocation6] sm:$0xff] }
   0xe   :  { %v74_v6 = vld [vmem:[#allocation6 + $0x8] sm:$0xff]  ;;  %v75_v7 = vld [vmem:[#allocation6 + $0x10] sm:$0xff]  ;;  %v76_v8 = vld [vmem:[#allocation6 + $0x18] sm:$0x7]  ;;  %v77_v9 = vsub.f32 %v69_v1, %v73_v5  ;;  %v147_v26 = vshrl.u32 %v146_v23, 7  ;;  %v152_v37 = vand.u32 127, %v146_v23 }
   0xf   :  { %v78_v10 = vsub.f32 %v70_v2, %v74_v6  ;;  %v79_v11 = vsub.f32 %v71_v3, %v75_v7  ;;  %v80_v12 = vsub.f32 %v72_v4, %v76_v8  ;;  %s321_s0 = smov [#allocation8]   ;;  %s201_s23 = sshll.u32 %s348_s2, 4  ;;  %s202_s23 = int_to_ptr.hbm [resolvable:$true] %s201_s23 }
  0x10   :  { %v89_v13 = vand.u32 2147483647, %v77_v9  ;;  %v148_v28 = vadd.s32 8, %v147_v26  ;;  %v149_v31 = vadd.s32 16, %v147_v26  ;;  %v150_v34 = vadd.s32 24, %v147_v26  ;;  %s199_s1 = sshll.u32 %s321_s0, 4  ;;  %s200_s1 = int_to_ptr.vmem [resolvable:$true] %s199_s1 }
  0x11   :  { %v90_v14 = vand.u32 2147483647, %v78_v10  ;;  %v91_v15 = vand.u32 2147483647, %v79_v11  ;;  %v92_v16 = vand.u32 2147483647, %v80_v12 }
  0x12   :  { %v93_v17 = vsub.f32 0.0, %v89_v13  ;;  %v159_v38 = vmul.u32 128, %v147_v26  ;;  %v81_v39 = vsub.f32 0.0, %v77_v9  ;;  %v160_v41 = vmul.u32 128, %v148_v28 }
  0x13   :  { %v94_v18 = vsub.f32 0.0, %v90_v14  ;;  %v95_v19 = vsub.f32 0.0, %v91_v15  ;;  %v96_v20 = vsub.f32 0.0, %v92_v16  ;;  %v82_v42 = vsub.f32 0.0, %v78_v10 }
  0x14   :  { %v97_v21 = vmul.f32 1.442695, %v93_v17  ;;  %v161_v43 = vmul.u32 128, %v149_v31  ;;  %v83_v44 = vsub.f32 0.0, %v79_v11  ;;  %v162_v45 = vmul.u32 128, %v150_v34 }
  0x15   :  { %v99_v22 = vmul.f32 1.442695, %v94_v18  ;;  %v101_v24 = vmul.f32 1.442695, %v95_v19  ;;  %v103_v25 = vmul.f32 1.442695, %v96_v20  ;;  %v163_v47 = vadd.s32 %v159_v38, %v152_v37 }
  0x16   :  { %222 = vpow2.f32 %v97_v21  ;;  %v84_v46 = vsub.f32 0.0, %v80_v12  ;;  %v85_v48 = vmax.f32 %v81_v39, 0.0  ;;  %v164_v49 = vadd.s32 %v160_v41, %v152_v37  ;;  %v175_v16 = vld [vmem:[#allocation2] sm:$0x1] }
  0x17   :  { %224 = vpow2.f32 %v99_v22  ;;  %v86_v51 = vmax.f32 %v82_v42, 0.0  ;;  %v165_v52 = vadd.s32 %v161_v43, %v152_v37  ;;  %v87_v54 = vmax.f32 %v83_v44, 0.0 }
  0x18   :  { %226 = vpow2.f32 %v101_v24  ;;  %v166_v56 = vadd.s32 %v162_v45, %v152_v37  ;;  %v88_v58 = vmax.f32 %v84_v46, 0.0  ;;  %vm167_vm0 = vcmp.lt.s32.totalorder %v163_v47, 3333 }
  0x19   :  { %228 = vpow2.f32 %v103_v25  ;;  %vm168_vm1 = vcmp.lt.s32.totalorder %v164_v49, 3333  ;;  %vm169_vm2 = vcmp.lt.s32.totalorder %v165_v52, 3333 }
  0x1a   :  { %vm170_vm3 = vcmp.lt.s32.totalorder %v166_v56, 3333 }
  0x1c   :  { %v223_v27 = vpop.eup %222 }
  0x1d   :  { %v225_v29 = vpop.eup %224  ;;  %v105_v30 = vadd.f32 1.0, %v223_v27 }
  0x1e   :  { %v227_v32 = vpop.eup %226  ;;  %v106_v33 = vadd.f32 1.0, %v225_v29 }
  0x1f   :  { %v229_v35 = vpop.eup %228  ;;  %v107_v36 = vadd.f32 1.0, %v227_v32  ;;  %230 = vlog2.f32 %v105_v30 }
  0x20   :  { %v108_v40 = vadd.f32 1.0, %v229_v35  ;;  %232 = vlog2.f32 %v106_v33 }
  0x21   :  { %234 = vlog2.f32 %v107_v36 }
  0x22   :  { %236 = vlog2.f32 %v108_v40 }
  0x25   :  { %v231_v50 = vpop.eup %230 }
  0x26   :  { %v233_v53 = vpop.eup %232  ;;  %v110_v55 = vmul.f32 0.6931472, %v231_v50 }
  0x27   :  { %v235_v57 = vpop.eup %234  ;;  %v112_v59 = vmul.f32 0.6931472, %v233_v53 }
  0x28   :  { %v237_v60 = vpop.eup %236  ;;  %v114_v61 = vmul.f32 0.6931472, %v235_v57  ;;  %v117_v62 = vadd.f32 %v110_v55, %v85_v48 }
  0x29   :  { %v116_v63 = vmul.f32 0.6931472, %v237_v60  ;;  %v118_v0 = vadd.f32 %v112_v59, %v86_v51 }
  0x2a   :  { %v119_v1 = vadd.f32 %v114_v61, %v87_v54  ;;  %v171_v2 = vsel %vm167_vm0, %v117_v62, 0.0 }
  0x2b   :  { %v120_v3 = vadd.f32 %v116_v63, %v88_v58  ;;  %v172_v4 = vsel %vm168_vm1, %v118_v0, 0.0 }
  0x2c   :  { %v173_v5 = vsel %vm169_vm2, %v119_v1, 0.0  ;;  %v176_v6 = vadd.f32 %v172_v4, %v171_v2 }
  0x2d   :  { %v174_v7 = vsel %vm170_vm3, %v120_v3, 0.0 }
  0x2e   :  { %v177_v8 = vadd.f32 %v176_v6, %v173_v5  ;;  %v179_v9 = vsel %vm178_vm4, %v174_v7, 0.0 }
  0x30   :  { %v180_v10 = vadd.f32 %v179_v9, %v177_v8 }
  0x32   :  { %v181_v11 = vrot.slane %v180_v10, 4 }
  0x34   :  { %v182_v12 = vadd.f32 %v181_v11, %v180_v10 }
  0x36   :  { %v183_v13 = vrot.slane %v182_v12, 2 }
  0x38   :  { %v184_v14 = vadd.f32 %v183_v13, %v182_v12 }
  0x3a   :  { %v185_v15 = vrot.slane %v184_v14, 1 }
  0x3c   :  { %v186_v17 = vadd.f32 %v185_v15, %v184_v14 }
  0x3e   :  { %v187_v18 = vadd.f32 %v186_v17, %v175_v16 }
  0x40   :  { %188 = vst [vmem:[#allocation2] sm:$0x1] %v187_v18 }
  0x47   :  { %v192_v19 = vld [vmem:[#allocation2] sm:$0x1] }
  0x48   :  { %193 = vst [vmem:[#allocation8] sm:$0x1] %v192_v19 }
  0x49   :  { %204 = dma.vmem_to_hbm [thread:$0]  %s200_s1, 16, %s202_s23, [#allocation5]  }
  0x4a   :  { %314 = dma.done.wait [#allocation5], 16  }
  0x4b   :  { %315 = vsyncadd [#allocation5], 4294967280 }
  0x4c   :  { %209 = vsyncpa [#allocation4], 1 }
  0x4d   :  { %210 = vsyncpa [#allocation7], 1 }
  0x4e   :  { %211 = vsyncpa [#allocation5], 1 }

</bundles_post_ra>
